<compile_context>
chip_gen: v5e
topology: v5e:2x2
jax: 0.10.0
libtpu: 0.0.40
codegen_flags: <defaults>
</compile_context>

<pallas_src>
import jax
import jax.numpy as jnp
from jax.experimental import pallas as pl
from jax.experimental.pallas import tpu as pltpu


def _round_up(n: int, m: int) -> int:
    return ((n + m - 1) // m) * m


def se_block_kernel(x_ref, w1_ref, b1_ref, w2_ref, b2_ref, o_ref):
    x = x_ref[...]                                    # (TB, Dp) f32
    xb = x.astype(jnp.bfloat16)

    # linear1 (bf16 MXU, f32 accumulate) + bias + ReLU
    h = jnp.dot(xb, w1_ref[...], preferred_element_type=jnp.float32)
    h = jnp.maximum(h + b1_ref[...], 0.0)             # (TB, Dp) f32

    # linear2 (bf16 MXU, f32 accumulate) + bias + sigmoid (EUP)
    g = jnp.dot(h.astype(jnp.bfloat16), w2_ref[...],
                preferred_element_type=jnp.float32)
    g = jax.nn.sigmoid(g + b2_ref[...])               # (TB, Dp) f32

    # gate the original (f32) input
    o_ref[...] = (x * g).astype(o_ref.dtype)


def se_block(x, w1_t, b1, w2_t, b2, *, tb_max=None):
    """x: (B, D) f32; w*_t: (D, D) pre-transposed (in_dim, out_dim); b*: (D,)."""
    B, D = x.shape

    # ---- generation-aware VMEM budget --------------------------------------
    try:
        vmem_phys = int(pltpu.get_tpu_info().vmem_capacity_bytes)
    except Exception:
        vmem_phys = 64 << 20                      # conservative fallback (v7x-sized)
    vmem_budget = int(0.9 * vmem_phys)
    small_vmem = vmem_phys <= (96 << 20)          # v7x-like (64 MiB/TC); v5e/v6e have 128 MiB

    if tb_max is None:
        # Bigger tiles amortize per-grid-step overhead on v5e/v6e (slow HBM,
        # big VMEM); smaller default on v7x to stay clear of its 64 MiB VMEM.
        tb_max = 256 if small_vmem else 1024

    # ---- pad D to a multiple of 128 for lane-dense loads/stores ------------
    Dp = max(128, _round_up(D, 128))
    pad_d = Dp - D
    if pad_d:
        x_in = jnp.pad(x, ((0, 0), (0, pad_d)))
        w1_t = jnp.pad(w1_t, ((0, pad_d), (0, pad_d)))
        w2_t = jnp.pad(w2_t, ((0, pad_d), (0, pad_d)))
        b1 = jnp.pad(b1, (0, pad_d))
        b2 = jnp.pad(b2, (0, pad_d))
    else:
        x_in = x

    # bf16 weights (MXU-fast on v5e/v6e/v7x); biases stay f32.
    w1_bf = w1_t.astype(jnp.bfloat16)
    w2_bf = w2_t.astype(jnp.bfloat16)
    b1_2d = b1.reshape(1, Dp).astype(jnp.float32)
    b2_2d = b2.reshape(1, Dp).astype(jnp.float32)

    # ---- tile count / size: even split, minimal padding --------------------
    # On v7x, ensure >= 2 batch tiles (when there is enough work) so the
    # "parallel" grid axis lands on both TensorCores.
    min_tiles = 2 if (small_vmem and B > 8) else 1
    n_tiles = max(min_tiles, pl.cdiv(B, tb_max))
    TB = _round_up(pl.cdiv(B, n_tiles), 8)

    # Clamp TB so everything fits the VMEM budget:
    #   resident (single-buffered): bf16 W1 + W2, f32 biases
    #   per-tile: x/out f32 double-buffered (4*TB*Dp*4) + intermediates
    #             h, g (f32) and bf16 casts (~3*TB*Dp*4)
    resident = 2 * Dp * Dp * 2 + 2 * Dp * 4
    per_row = 7 * Dp * 4
    avail = vmem_budget - resident - (2 << 20)
    if avail > 0:
        tb_cap = max(8, (avail // per_row // 8) * 8)
        TB = min(TB, int(tb_cap))
    # (else: weights alone exceed the budget -> see TODO(synk) above.)

    B_p = _round_up(B, TB)
    x_p = x_in if B_p == B else jnp.pad(x_in, ((0, B_p - B), (0, 0)))
    n_tiles = B_p // TB

    est = resident + per_row * TB
    vmem_limit = int(min(max(est + (2 << 20), 16 << 20), vmem_budget))

    out = pl.pallas_call(
        se_block_kernel,
        out_shape=jax.ShapeDtypeStruct((B_p, Dp), x.dtype),
        grid_spec=pltpu.PrefetchScalarGridSpec(
            num_scalar_prefetch=0,
            grid=(n_tiles,),
            in_specs=[
                pl.BlockSpec((TB, Dp), lambda i: (i, 0)),         # x   (moving, 2-buf)
                pl.BlockSpec((Dp, Dp), lambda i: (0, 0),
                             pipeline_mode=pl.Buffered(1)),        # W1^T (resident)
                pl.BlockSpec((1, Dp), lambda i: (0, 0),
                             pipeline_mode=pl.Buffered(1)),        # b1   (resident)
                pl.BlockSpec((Dp, Dp), lambda i: (0, 0),
                             pipeline_mode=pl.Buffered(1)),        # W2^T (resident)
                pl.BlockSpec((1, Dp), lambda i: (0, 0),
                             pipeline_mode=pl.Buffered(1)),        # b2   (resident)
            ],
            out_specs=pl.BlockSpec((TB, Dp), lambda i: (i, 0)),
        ),
        compiler_params=pltpu.CompilerParams(
            dimension_semantics=("parallel",),   # batch tiles are independent
            vmem_limit_bytes=vmem_limit,
        ),
    )(x_p, w1_bf, b1_2d, w2_bf, b2_2d)

    if B_p != B:
        out = out[:B]
    if pad_d:
        out = out[:, :D]
    return out


def se_block_ref_bf16(x, w1_t, b1, w2_t, b2):
    """Reference matching the kernel's numerics (bf16 dots, f32 accumulate)."""
    h = jnp.dot(x.astype(jnp.bfloat16), w1_t.astype(jnp.bfloat16),
                preferred_element_type=jnp.float32) + b1
    h = jnp.maximum(h, 0.0)
    g = jnp.dot(h.astype(jnp.bfloat16), w2_t.astype(jnp.bfloat16),
                preferred_element_type=jnp.float32) + b2
    return x * jax.nn.sigmoid(g)


def se_block_ref_f32(x, w1_t, b1, w2_t, b2):
    h = jnp.maximum(x @ w1_t + b1, 0.0)
    return x * jax.nn.sigmoid(h @ w2_t + b2)


if __name__ == "__main__":
    B, D = 8, 32  # batch, input_dim

    key = jax.random.PRNGKey(0)
    kx, kw1, kb1, kw2, kb2 = jax.random.split(key, 5)

    x = jax.random.normal(kx, (B, D), dtype=jnp.float32)
    bound = 1.0 / (D ** 0.5)
    w1_t = jax.random.uniform(kw1, (D, D), jnp.float32, -bound, bound)
    b1 = jax.random.uniform(kb1, (D,), jnp.float32, -bound, bound)
    w2_t = jax.random.uniform(kw2, (D, D), jnp.float32, -bound, bound)
    b2 = jax.random.uniform(kb2, (D,), jnp.float32, -bound, bound)

    out = se_block(x, w1_t, b1, w2_t, b2)
    out = jax.block_until_ready(out)
    assert out.shape == (B, D)

    # Primary check: against a reference using the same bf16-matmul numerics.
    ref_bf = se_block_ref_bf16(x, w1_t, b1, w2_t, b2)
    assert jnp.allclose(out, ref_bf, atol=2e-3, rtol=2e-3), "mismatch vs bf16 ref"

    # Secondary sanity check: against the full-f32 PyTorch-equivalent math
    # (looser tolerance because the kernel's matmuls run in bf16).
    ref_f32 = se_block_ref_f32(x, w1_t, b1, w2_t, b2)
    assert jnp.allclose(out, ref_f32, atol=1e-1, rtol=1e-1), "mismatch vs f32 ref"

    print("KERNEL_OK")
</pallas_src>

<mosaic_0001>
module attributes {stable_mosaic.version = 11 : i64} {
  func.func @se_block_kernel(%arg0: i32, %arg1: memref<8x128xf32, #tpu.memory_space<vmem>>, %arg2: memref<128x128xbf16, #tpu.memory_space<vmem>>, %arg3: memref<1x128xf32, #tpu.memory_space<vmem>>, %arg4: memref<128x128xbf16, #tpu.memory_space<vmem>>, %arg5: memref<1x128xf32, #tpu.memory_space<vmem>>, %arg6: memref<8x128xf32, #tpu.memory_space<vmem>>) attributes {dimension_semantics = [#tpu.dimension_semantics<parallel>], iteration_bounds = array<i64: 1>, scalar_prefetch = 0 : i64, scratch_operands = 0 : i64, tpu.core_type = #tpu.core_type<tc>, window_params = [{transform_indices = @transform_0, window_bounds = array<i64: 8, 128>}, {pipeline_mode = #tpu.pipeline_mode<synchronous>, transform_indices = @transform_1, window_bounds = array<i64: 128, 128>}, {pipeline_mode = #tpu.pipeline_mode<synchronous>, transform_indices = @transform_2, window_bounds = array<i64: 1, 128>}, {pipeline_mode = #tpu.pipeline_mode<synchronous>, transform_indices = @transform_3, window_bounds = array<i64: 128, 128>}, {pipeline_mode = #tpu.pipeline_mode<synchronous>, transform_indices = @transform_4, window_bounds = array<i64: 1, 128>}, {transform_indices = @transform_5, window_bounds = array<i64: 8, 128>}]} {
    %c0 = arith.constant 0 : index
    %c0_0 = arith.constant 0 : index
    %0 = vector.load %arg1[%c0, %c0_0] : memref<8x128xf32, #tpu.memory_space<vmem>>, vector<8x128xf32>
    %1 = arith.truncf %0 : vector<8x128xf32> to vector<8x128xbf16>
    %c0_1 = arith.constant 0 : index
    %c0_2 = arith.constant 0 : index
    %2 = vector.load %arg2[%c0_1, %c0_2] : memref<128x128xbf16, #tpu.memory_space<vmem>>, vector<128x128xbf16>
    %cst = arith.constant dense<0.000000e+00> : vector<8x128xf32>
    %3 = tpu.matmul %1, %2, %cst {dimension_numbers = #tpu.dot_dimension_numbers<[1], [0], [0], [1], [0, 0, 1, 1], [], []>} : vector<8x128xbf16>, vector<128x128xbf16>, vector<8x128xf32> -> vector<8x128xf32>
    %c0_3 = arith.constant 0 : index
    %c0_4 = arith.constant 0 : index
    %4 = vector.load %arg3[%c0_3, %c0_4] : memref<1x128xf32, #tpu.memory_space<vmem>>, vector<1x128xf32>
    %5 = vector.broadcast %4 : vector<1x128xf32> to vector<8x128xf32>
    %6 = arith.addf %3, %5 : vector<8x128xf32>
    %cst_5 = arith.constant 0.000000e+00 : f32
    %7 = vector.broadcast %cst_5 : f32 to vector<8x128xf32>
    %8 = arith.maximumf %6, %7 : vector<8x128xf32>
    %9 = arith.truncf %8 : vector<8x128xf32> to vector<8x128xbf16>
    %c0_6 = arith.constant 0 : index
    %c0_7 = arith.constant 0 : index
    %10 = vector.load %arg4[%c0_6, %c0_7] : memref<128x128xbf16, #tpu.memory_space<vmem>>, vector<128x128xbf16>
    %cst_8 = arith.constant dense<0.000000e+00> : vector<8x128xf32>
    %11 = tpu.matmul %9, %10, %cst_8 {dimension_numbers = #tpu.dot_dimension_numbers<[1], [0], [0], [1], [0, 0, 1, 1], [], []>} : vector<8x128xbf16>, vector<128x128xbf16>, vector<8x128xf32> -> vector<8x128xf32>
    %c0_9 = arith.constant 0 : index
    %c0_10 = arith.constant 0 : index
    %12 = vector.load %arg5[%c0_9, %c0_10] : memref<1x128xf32, #tpu.memory_space<vmem>>, vector<1x128xf32>
    %13 = vector.broadcast %12 : vector<1x128xf32> to vector<8x128xf32>
    %14 = arith.addf %11, %13 : vector<8x128xf32>
    %15 = arith.negf %14 : vector<8x128xf32>
    %16 = math.exp %15 : vector<8x128xf32>
    %cst_11 = arith.constant 1.000000e+00 : f32
    %17 = vector.broadcast %cst_11 : f32 to vector<8x128xf32>
    %18 = arith.addf %17, %16 : vector<8x128xf32>
    %19 = arith.divf %17, %18 : vector<8x128xf32>
    %20 = arith.mulf %0, %19 : vector<8x128xf32>
    %c0_12 = arith.constant 0 : index
    %c0_13 = arith.constant 0 : index
    %21 = vector.load %arg6[%c0_12, %c0_13] : memref<8x128xf32, #tpu.memory_space<vmem>>, vector<8x128xf32>
    tpu.vector_store %arg6[%c0_12, %c0_13], %20 {strides = array<i32>} : memref<8x128xf32, #tpu.memory_space<vmem>>, vector<8x128xf32>,
    return
  }
  func.func @transform_0(%arg0: i32) -> (i32, i32) {
    %c0_i32 = arith.constant 0 : i32
    %c0_i32_0 = arith.constant 0 : i32
    return %arg0, %c0_i32 : i32, i32
  }
  func.func @transform_1(%arg0: i32) -> (i32, i32) {
    %c0_i32 = arith.constant 0 : i32
    %c0_i32_0 = arith.constant 0 : i32
    %c0_i32_1 = arith.constant 0 : i32
    return %c0_i32, %c0_i32_0 : i32, i32
  }
  func.func @transform_2(%arg0: i32) -> (i32, i32) {
    %c0_i32 = arith.constant 0 : i32
    %c0_i32_0 = arith.constant 0 : i32
    %c0_i32_1 = arith.constant 0 : i32
    return %c0_i32, %c0_i32_0 : i32, i32
  }
  func.func @transform_3(%arg0: i32) -> (i32, i32) {
    %c0_i32 = arith.constant 0 : i32
    %c0_i32_0 = arith.constant 0 : i32
    %c0_i32_1 = arith.constant 0 : i32
    return %c0_i32, %c0_i32_0 : i32, i32
  }
  func.func @transform_4(%arg0: i32) -> (i32, i32) {
    %c0_i32 = arith.constant 0 : i32
    %c0_i32_0 = arith.constant 0 : i32
    %c0_i32_1 = arith.constant 0 : i32
    return %c0_i32, %c0_i32_0 : i32, i32
  }
  func.func @transform_5(%arg0: i32) -> (i32, i32) {
    %c0_i32 = arith.constant 0 : i32
    %c0_i32_0 = arith.constant 0 : i32
    return %arg0, %c0_i32 : i32, i32
  }
}

</mosaic_0001>

<bundles_post_ra>
// kernel: tpu_custom_call.1
= control target key start
LH: loop header
LB: loop body
LE: loop exit
PB: predicated region body
PF: predicated region fallthrough
CT: control target
= control target key end

     0   :  { %10 = vsyncpa [#allocation3], 0  ;;  %s520_s0 = inlined_call_operand.hbm [shape: f32[8,128], index: 0, kind: input, shape index: {}]   ;;  %s521_s1 = inlined_call_operand.hbm [shape: bf16[128,128], index: 1, kind: input, shape index: {}]   ;;  %s522_s2 = inlined_call_operand.vmem [shape: f32[1,128], index: 2, kind: input, shape index: {}]   ;;  %s523_s3 = inlined_call_operand.hbm [shape: bf16[128,128], index: 3, kind: input, shape index: {}]   ;;  %s524_s4 = inlined_call_operand.vmem [shape: f32[1,128], index: 4, kind: input, shape index: {}]   ;;  %s525_s5 = inlined_call_operand.hbm [shape: f32[8,128], index: 5, kind: output, shape index: {}]  }
   0x1   :  { %11 = vsyncpa [#allocation6], 0  ;;  %s28_s20 = sshll.u32 %s521_s1, 4  ;;  %s29_s20 = int_to_ptr.hbm [resolvable:$true] %s28_s20 }
   0x2   :  { %12 = vsyncpa [#allocation4], 0  ;;  %s466_s21 = smov [#allocation5]   ;;  %s18_s25 = sshll.u32 %s520_s0, 4  ;;  %s19_s25 = int_to_ptr.hbm [resolvable:$true] %s18_s25 }
   0x3   :  { %s30_s22 = sshll.u32 %s466_s21, 4  ;;  %s467_s26 = smov 64   ;;  %s31_s22 = int_to_ptr.vmem [resolvable:$true] %s30_s22 }
   0x4   :  { %s468_s27 = smov 4   ;;  %s469_s28 = smov [#allocation2]  }
   0x5   :  { %36 = dma.hbm_to_vmem [thread:$0]  %s29_s20, 1024, %s31_s22, [#allocation6], %s467_s26, %s467_s26, %s468_s27  }
   0x6   :  { %s20_s29 = sshll.u32 %s469_s28, 4  ;;  %s43_s7 = sshll.u32 %s523_s3, 4  ;;  %s21_s29 = int_to_ptr.vmem [resolvable:$true] %s20_s29  ;;  %s44_s7 = int_to_ptr.hbm [resolvable:$true] %s43_s7 }
   0x7   :  { %23 = dma.hbm_to_vmem [thread:$0]  %s19_s25, 128, %s21_s29, [#allocation3]  }
   0x8   :  { %s470_s1 = smov [#allocation7]  }
   0x9   :  { %s45_s8 = sshll.u32 %s470_s1, 4  ;;  %s46_s8 = int_to_ptr.vmem [resolvable:$true] %s45_s8 }
   0xa   :  { %51 = dma.hbm_to_vmem [thread:$0]  %s44_s7, 1024, %s46_s8, [#allocation6], %s467_s26, %s467_s26, %s468_s27  }
   0xb   :  { %460 = dma.done.wait [#allocation3], 128  }
   0xc   :  { %461 = vsyncadd [#allocation3], 4294967168 }
   0xd   :  { %462 = dma.done.wait [#allocation6], 2048  }
   0xe   :  { %463 = vsyncadd [#allocation6], 4294965248  ;;  %v343_v0 = vld [vmem:[#allocation5 + $0x38] sm:$0xff]  ;;  %v342_v1 = vld [vmem:[#allocation5 + $0x30] sm:$0xff]  ;;  %s260_s13 = sshll.u32 %s525_s5, 4  ;;  %s261_s13 = int_to_ptr.hbm [resolvable:$true] %s260_s13 }
   0xf   :  { %136 = vmatpush.bf16.msra.mxu0 %v343_v0  ;;  %v351_v2 = vld [vmem:[#allocation7 + $0x38] sm:$0xff]  ;;  %v350_v3 = vld [vmem:[#allocation7 + $0x30] sm:$0xff]  ;;  %v341_v4 = vld [vmem:[#allocation5 + $0x28] sm:$0xff] }
  0x10   :  { %219 = vmatpush.bf16.msra.mxu1 %v351_v2  ;;  %v349_v5 = vld [vmem:[#allocation7 + $0x28] sm:$0xff]  ;;  %v340_v6 = vld [vmem:[#allocation5 + $0x20] sm:$0xff]  ;;  %v339_v8 = vld [vmem:[#allocation5 + $0x18] sm:$0xff] }
  0x11   :  { %v348_v7 = vld [vmem:[#allocation7 + $0x20] sm:$0xff]  ;;  %v347_v9 = vld [vmem:[#allocation7 + $0x18] sm:$0xff]  ;;  %v338_v10 = vld [vmem:[#allocation5 + $0x10] sm:$0xff] }
  0x12   :  { %v346_v11 = vld [vmem:[#allocation7 + $0x10] sm:$0xff]  ;;  %v337_v12 = vld [vmem:[#allocation5 + $0x8] sm:$0xff]  ;;  %v336_v13 = vld [vmem:[#allocation5] sm:$0xff] }
  0x13   :  { %137 = vmatpush.bf16.msra.mxu0 %v342_v1  ;;  %v66_v14 = vld [vmem:[#allocation2] sm:$0xff]  ;;  %v345_v16 = vld [vmem:[#allocation7 + $0x8] sm:$0xff]  ;;  %v344_v17 = vld [vmem:[#allocation7] sm:$0xff] }
  0x14   :  { %220 = vmatpush.bf16.msra.mxu1 %v350_v3  ;;  %v67_v15 = vpack.c.bf16 %v66_v14, %v66_v14  ;;  %v358_v18 = vld [vmem:[%s522_s2] ss:$0 sm:$0xff]  ;;  %s471_s2 = smov [#allocation8]  }
  0x15   :  { %v359_v24 = vld [vmem:[%s524_s4] ss:$0 sm:$0xff]  ;;  %s258_s4 = sshll.u32 %s471_s2, 4  ;;  %s259_s4 = int_to_ptr.vmem [resolvable:$true] %s258_s4 }
  0x17   :  { %138 = vmatpush.bf16.msra.mxu0 %v341_v4 }
  0x18   :  { %221 = vmatpush.bf16.msra.mxu1 %v349_v5 }
  0x1b   :  { %139 = vmatpush.bf16.msra.mxu0 %v340_v6 }
  0x1c   :  { %222 = vmatpush.bf16.msra.mxu1 %v348_v7 }
  0x1f   :  { %140 = vmatpush.bf16.msra.mxu0 %v339_v8 }
  0x20   :  { %223 = vmatpush.bf16.msra.mxu1 %v347_v9 }
  0x23   :  { %141 = vmatpush.bf16.msra.mxu0 %v338_v10 }
  0x24   :  { %224 = vmatpush.bf16.msra.mxu1 %v346_v11 }
  0x27   :  { %142 = vmatpush.bf16.msra.mxu0 %v337_v12 }
  0x28   :  { %225 = vmatpush.bf16.msra.mxu1 %v345_v16 }
  0x2b   :  { %143 = vmatpush.bf16.msra.mxu0 %v336_v13 }
  0x2c   :  { %226 = vmatpush.bf16.msra.mxu1 %v344_v17 }
  0x2e   :  { %144 = vmatmul.bf16.vlgmr.msra.gmra.mxu0 %v67_v15 }
  0xab   :  { %v145_v19 = vpop.f32.mrf.mxu0 }
  0xac   :  { %v146_v20 = vadd.f32 %v358_v18, %v145_v19 }
  0xae   :  { %v149_v21 = vmax.f32 %v146_v20, 0.0 }
  0xb0   :  { %v150_v22 = vpack.c.bf16 %v149_v21, %v149_v21 }
  0xb2   :  { %227 = vmatmul.bf16.vlgmr.msra.gmra.mxu1 %v150_v22 }
  0xb3   :  { %v147_v23 = vpop.f32.mrf.mxu0 }
 0x12f   :  { %v228_v25 = vpop.f32.mrf.mxu1 }
 0x130   :  { %v229_v26 = vadd.f32 %v359_v24, %v228_v25 }
 0x132   :  { %v335_v27 = vmul.f32 -1.442695, %v229_v26 }
 0x134   :  { %360 = vpow2.f32 %v335_v27 }
 0x137   :  { %v230_v28 = vpop.f32.mrf.mxu1 }
 0x13a   :  { %v361_v29 = vpop.eup %360 }
 0x13b   :  { %v235_v30 = vadd.f32 1.0, %v361_v29 }
 0x13d   :  { %362 = vrcp.f32 %v235_v30  ;;  %v247_v34 = vand.u32 2147483648, %v235_v30  ;;  %v245_v36 = vand.u32 2147483647, %v235_v30  ;;  %vm241_vm1 = vweird.f32 %v235_v30 }
 0x13f   :  { %v248_v38 = vor.u32 1.1754944e-38, %v247_v34  ;;  %vm246_vm3 = vcmp.eq.f32.partialorder %v245_v36, 8.507059e+37 }
 0x143   :  { %v363_v31 = vpop.eup %362 }
 0x144   :  { %v237_v32 = vmul.f32 %v363_v31, %v235_v30  ;;  %vm242_vm0 = vweird.f32 %v363_v31 }
 0x145   :  { %vm243_vm2 = vmor %vm241_vm1, %vm242_vm0 }
 0x146   :  { %v238_v33 = vsub.f32 1.0, %v237_v32 }
 0x148   :  { %v239_v35 = vmul.f32 %v363_v31, %v238_v33 }
 0x14a   :  { %v240_v37 = vadd.f32 %v363_v31, %v239_v35 }
 0x14c   :  { %v244_v39 = vsel %vm243_vm2, %v363_v31, %v240_v37 }
 0x14d   :  { %v249_v40 = vsel %vm246_vm3, %v248_v38, %v244_v39 }
 0x14e   :  { %v251_v41 = vmul.f32 %v249_v40, %v66_v14 }
 0x150   :  { %252 = vst [vmem:[#allocation8] sm:$0xff] %v251_v41 }
 0x151   :  { %263 = dma.vmem_to_hbm [thread:$0]  %s259_s4, 128, %s261_s13, [#allocation4]  }
 0x152   :  { %464 = dma.done.wait [#allocation4], 128  }
 0x153   :  { %465 = vsyncadd [#allocation4], 4294967168 }
 0x154   :  { %268 = vsyncpa [#allocation3], 1 }
 0x155   :  { %269 = vsyncpa [#allocation6], 1 }
 0x156   :  { %270 = vsyncpa [#allocation4], 1 }

</bundles_post_ra>
